<compile_context>
chip_gen: v6e
topology: v6e:2x2x1
jax: 0.10.0
libtpu: 0.0.40
codegen_flags: <defaults>
</compile_context>

<pallas_src>
import functools

import jax
import jax.numpy as jnp
from jax.experimental import pallas as pl

_LANE = 128


def _round_up(n, m):
    return ((n + m - 1) // m) * m


def _fused_heads_kernel(x_ref, w_ref, b_ref, o_ref):
    # Single MXU pass over the fused (all-heads) weight; bias add on the f32
    # accumulator (VPU); no activation (these are logit heads).
    acc = jnp.dot(x_ref[...], w_ref[...], preferred_element_type=jnp.float32)
    o_ref[...] = (acc + b_ref[...]).astype(o_ref.dtype)


def _fused_linear(x, w_cat, b_cat):
    """y = x @ w_cat + b_cat.  Grid-less call, full-array VMEM blocks."""
    b, d_in = x.shape
    n_pad = w_cat.shape[1]
    return pl.pallas_call(
        _fused_heads_kernel,
        out_shape=jax.ShapeDtypeStruct((b, n_pad), jnp.float32),
        in_specs=[
            pl.BlockSpec((b, d_in), lambda: (0, 0)),
            pl.BlockSpec((d_in, n_pad), lambda: (0, 0)),
            pl.BlockSpec((1, n_pad), lambda: (0, 0)),
        ],
        out_specs=pl.BlockSpec((b, n_pad), lambda: (0, 0)),
    )(x, w_cat, b_cat)


def init_fused_head_params(weights, biases, dtype=jnp.float32):
    """One-time 'module init' preprocessing (NOT in the per-step forward path).

    weights: list of [class_num_i, D_in]  (PyTorch nn.Linear layout)
    biases:  list of [class_num_i]
    Returns (w_cat [D_in, N_pad], b_cat [1, N_pad], offsets, class_nums) where each
    head occupies a 128-lane-aligned slot of the fused output axis.
    """
    class_nums = tuple(int(w.shape[0]) for w in weights)
    d_in = int(weights[0].shape[1])
    w_blocks, b_blocks, offsets = [], [], []
    off = 0
    for w, b, n in zip(weights, biases, class_nums):
        assert w.shape == (n, d_in), "weight shape mismatch"
        assert b.shape == (n,), "bias shape mismatch"
        n_pad = _round_up(n, _LANE)
        w_blocks.append(jnp.pad(jnp.transpose(w), ((0, 0), (0, n_pad - n))))
        b_blocks.append(jnp.pad(b, (0, n_pad - n)))
        offsets.append(off)
        off += n_pad
    w_cat = jnp.concatenate(w_blocks, axis=1).astype(dtype)             # [D_in, N_pad]
    b_cat = jnp.concatenate(b_blocks, axis=0)[None, :].astype(jnp.float32)  # [1, N_pad]
    return jax.device_put(w_cat), jax.device_put(b_cat), tuple(offsets), class_nums


@functools.partial(jax.jit, static_argnames=("offsets", "class_nums"))
def multiple_categorical_recon_head(x, w_cat, b_cat, offsets, class_nums):
    """Forward pass: x [B, D_in] -> list of per-head logits [B, class_num_i]."""
    y = _fused_linear(x.astype(w_cat.dtype), w_cat, b_cat)  # [B, N_pad] f32
    # Lane-aligned (multiple-of-128) slice starts -> cheap per-head splits.
    return [y[:, off:off + n] for off, n in zip(offsets, class_nums)]


def reference(x, weights, biases):
    return [x @ jnp.transpose(w) + b[None, :] for w, b in zip(weights, biases)]


if __name__ == "__main__":
    # selected_features = {"cat_a": (7, .), "cat_b": (13, .), "cat_c": (5, .), "cat_d": (23, .)}
    batch, input_dim = 8, 32
    class_nums = [7, 13, 5, 23]

    key = jax.random.PRNGKey(0)
    kx, key = jax.random.split(key)
    x = jax.random.normal(kx, (batch, input_dim), dtype=jnp.float32)

    # Deterministic nn.Linear-style init (uniform +/- 1/sqrt(in_features)).
    bound = 1.0 / (input_dim ** 0.5)
    weights, biases = [], []
    for n in class_nums:
        kw, kb, key = jax.random.split(key, 3)
        weights.append(jax.random.uniform(kw, (n, input_dim), jnp.float32, -bound, bound))
        biases.append(jax.random.uniform(kb, (n,), jnp.float32, -bound, bound))

    # Module "init": fuse / lane-align / transpose the head params exactly once.
    w_cat, b_cat, offsets, cns = init_fused_head_params(weights, biases)

    outs = multiple_categorical_recon_head(x, w_cat, b_cat, offsets, cns)
    outs = jax.block_until_ready(outs)

    refs = reference(x, weights, biases)
    assert len(outs) == len(class_nums)
    for o, r, n in zip(outs, refs, class_nums):
        assert o.shape == (batch, n)
        assert jnp.allclose(o, r, atol=1e-5, rtol=1e-5), "mismatch vs reference"

    print("KERNEL_OK")
</pallas_src>

<mosaic_0001>
module attributes {stable_mosaic.version = 11 : i64} {
  func.func @_fused_heads_kernel(%arg0: memref<8x32xf32, #tpu.memory_space<vmem>>, %arg1: memref<32x512xf32, #tpu.memory_space<vmem>>, %arg2: memref<1x512xf32, #tpu.memory_space<vmem>>, %arg3: memref<8x512xf32, #tpu.memory_space<vmem>>) attributes {dimension_semantics = [], scalar_prefetch = 0 : i64, scratch_operands = 0 : i64, tpu.core_type = #tpu.core_type<tc>} {
    %c0 = arith.constant 0 : index
    %c0_0 = arith.constant 0 : index
    %0 = vector.load %arg0[%c0, %c0_0] : memref<8x32xf32, #tpu.memory_space<vmem>>, vector<8x32xf32>
    %c0_1 = arith.constant 0 : index
    %c0_2 = arith.constant 0 : index
    %1 = vector.load %arg1[%c0_1, %c0_2] : memref<32x512xf32, #tpu.memory_space<vmem>>, vector<32x512xf32>
    %cst = arith.constant dense<0.000000e+00> : vector<8x512xf32>
    %2 = tpu.matmul %0, %1, %cst {dimension_numbers = #tpu.dot_dimension_numbers<[1], [0], [0], [1], [0, 0, 1, 1], [], []>} : vector<8x32xf32>, vector<32x512xf32>, vector<8x512xf32> -> vector<8x512xf32>
    %c0_3 = arith.constant 0 : index
    %c0_4 = arith.constant 0 : index
    %3 = vector.load %arg2[%c0_3, %c0_4] : memref<1x512xf32, #tpu.memory_space<vmem>>, vector<1x512xf32>
    %4 = vector.broadcast %3 : vector<1x512xf32> to vector<8x512xf32>
    %5 = arith.addf %2, %4 : vector<8x512xf32>
    %c0_5 = arith.constant 0 : index
    %c0_6 = arith.constant 0 : index
    %6 = vector.load %arg3[%c0_5, %c0_6] : memref<8x512xf32, #tpu.memory_space<vmem>>, vector<8x512xf32>
    tpu.vector_store %arg3[%c0_5, %c0_6], %5 {strides = array<i32>} : memref<8x512xf32, #tpu.memory_space<vmem>>, vector<8x512xf32>,
    return
  }
}

</mosaic_0001>

<bundles_post_ra>
// kernel: multiple_categorical_recon_head.1
= control target key start
LH: loop header
LB: loop body
LE: loop exit
PB: predicated region body
PF: predicated region fallthrough
CT: control target
= control target key end

     0   :  { %8 = vsyncpa [#allocation3], 0  ;;  %s365_s0 = inlined_call_operand.hbm [shape: f32[8,32], index: 0, kind: input, shape index: {}]   ;;  %s366_s1 = inlined_call_operand.hbm [shape: f32[32,512], index: 1, kind: input, shape index: {}]   ;;  %s367_s2 = inlined_call_operand.hbm [shape: f32[1,512], index: 2, kind: input, shape index: {}]   ;;  %s368_s3 = inlined_call_operand.vmem [shape: f32[8,512], index: 3, kind: output, shape index: {}]  }
   0x1   :  { %9 = vsyncpa [#allocation5], 0  ;;  %s318_s12 = smov [#allocation4]  }
   0x2   :  { %s25_s13 = sshll.u32 %s318_s12, 4  ;;  %s26_s13 = int_to_ptr.vmem [resolvable:$true] %s25_s13 }
   0x3   :  { %s262_s14 = scalar_lea.vmem %s26_s13, 2048  ;;  %p267_p1 = scmp.lt.s32.totalorder %s26_s13, %s26_s13 }
   0x4   :  { %p263_p0 = scmp.ne.s32.totalorder %s26_s13, %s262_s14  ;;  %p268_p2 = scmp.lt.s32.totalorder %s262_s14, %s262_s14 }
   0x6   :  { %p269_p3 = por %p268_p2, %p267_p1 }
   0x8   :  { %p270_p4 = pnand %p269_p3, %p263_p0 }
   0xa   :  { %273 = shalt.err (!%p270_p4)
}
   0xb   :  { %s319_s15 = smov 512   ;;  %s320_s16 = smov 32  }
   0xc   :  { %31 = dma.hbm_to_vmem [thread:$0]  %s366_s1, 2048, %s26_s13, [#allocation5], %s319_s15, %s319_s15, %s320_s16  }
   0xd   :  { %s321_s19 = smov [#allocation2]   ;;  %s322_s21 = smov [#allocation6]  }
   0xe   :  { %s16_s20 = sshll.u32 %s321_s19, 4  ;;  %s38_s22 = sshll.u32 %s322_s21, 4  ;;  %s17_s20 = int_to_ptr.vmem [resolvable:$true] %s16_s20  ;;  %s39_s22 = int_to_ptr.vmem [resolvable:$true] %s38_s22 }
   0xf   :  { %s282_s23 = scalar_lea.vmem %s17_s20, 128  ;;  %p287_p6 = scmp.lt.s32.totalorder %s17_s20, %s17_s20 }
  0x10   :  { %p283_p5 = scmp.ne.s32.totalorder %s17_s20, %s282_s23  ;;  %p288_p7 = scmp.lt.s32.totalorder %s282_s23, %s282_s23 }
  0x12   :  { %p289_p8 = por %p288_p7, %p287_p6 }
  0x14   :  { %p290_p9 = pnand %p289_p8, %p283_p5 }
  0x16   :  { %293 = shalt.err (!%p290_p9)
}
  0x17   :  { %19 = dma.hbm_to_vmem [thread:$0]  %s365_s0, 128, %s17_s20, [#allocation3]  }
  0x18   :  { %s302_s26 = scalar_lea.vmem %s39_s22, 64  ;;  %p307_p11 = scmp.lt.s32.totalorder %s39_s22, %s39_s22 }
  0x19   :  { %p303_p10 = scmp.ne.s32.totalorder %s39_s22, %s302_s26  ;;  %p308_p12 = scmp.lt.s32.totalorder %s302_s26, %s302_s26 }
  0x1b   :  { %p309_p13 = por %p308_p12, %p307_p11 }
  0x1d   :  { %p310_p0 = pnand %p309_p13, %p303_p10 }
  0x1f   :  { %313 = shalt.err (!%p310_p0)
}
  0x20   :  { %41 = dma.hbm_to_vmem [thread:$0]  %s367_s2, 64, %s39_s22, [#allocation5]  }
  0x21   :  { %314 = dma.done.wait [#allocation3], 128  }
  0x22   :  { %315 = vsyncadd [#allocation3], 4294967168 }
  0x23   :  { %316 = dma.done.wait [#allocation5], 2112  }
  0x24   :  { %317 = vsyncadd [#allocation5], 4294965184  ;;  %v323_v0 = vmov 0.0   ;;  %v65_v1 = vld [vmem:[#allocation4 + $0x68] sm:$0xff]  ;;  %v67_v2 = vld [vmem:[#allocation4 + $0x78] sm:$0xff]  ;;  %vm90_vm0 = vcmask 261120   ;;  %v70_v18 = vlaneseq }
  0x25   :  { %158 = vmatprep.mubr.f32.mxu0 %v323_v0  ;;  %229 = vmatprep.mubr.f32.mxu1 %v323_v0  ;;  %v64_v3 = vld [vmem:[#allocation4 + $0x60] sm:$0xff]  ;;  %v66_v4 = vld [vmem:[#allocation4 + $0x70] sm:$0xff]  ;;  %v61_v5 = vld [vmem:[#allocation4 + $0x48] sm:$0xff] }
  0x26   :  { %118 = vmatprep.subr.mxu0 %v65_v1  ;;  %189 = vmatprep.subr.mxu1 %v67_v2  ;;  %v63_v6 = vld [vmem:[#allocation4 + $0x58] sm:$0xff]  ;;  %v60_v7 = vld [vmem:[#allocation4 + $0x40] sm:$0xff]  ;;  %v62_v8 = vld [vmem:[#allocation4 + $0x50] sm:$0xff]  ;;  %v71_v19 = vshrl.u32 %v70_v18, 7 }
  0x27   :  { %119 = vmatpush1.msra.mxu0 %v64_v3  ;;  %190 = vmatpush1.msra.mxu1 %v66_v4  ;;  %v57_v9 = vld [vmem:[#allocation4 + $0x28] sm:$0xff]  ;;  %v59_v10 = vld [vmem:[#allocation4 + $0x38] sm:$0xff]  ;;  %v56_v11 = vld [vmem:[#allocation4 + $0x20] sm:$0xff] }
  0x28   :  { %120 = vmatprep.subr.mxu0 %v61_v5  ;;  %191 = vmatprep.subr.mxu1 %v63_v6  ;;  %v58_v12 = vld [vmem:[#allocation4 + $0x30] sm:$0xff]  ;;  %v53_v13 = vld [vmem:[#allocation4 + $0x8] sm:$0xff]  ;;  %v55_v14 = vld [vmem:[#allocation4 + $0x18] sm:$0xff]  ;;  %v72_v20 = vsub.s32 0, %v71_v19  ;;  %v80_v21 = vsub.s32 2, %v71_v19  ;;  %v76_v23 = vsub.s32 1, %v71_v19 }
  0x29   :  { %121 = vmatpush1.msra.mxu0 %v60_v7  ;;  %192 = vmatpush1.msra.mxu1 %v62_v8  ;;  %v52_v15 = vld [vmem:[#allocation4] sm:$0xff]  ;;  %v54_v16 = vld [vmem:[#allocation4 + $0x10] sm:$0xff]  ;;  %v51_v17 = vld [vmem:[#allocation2] sm:$0xff]  ;;  %v84_v24 = vsub.s32 3, %v71_v19 }
  0x2a   :  { %122 = vmatprep.subr.mxu0 %v57_v9  ;;  %193 = vmatprep.subr.mxu1 %v59_v10  ;;  %v68_v22 = vld [vmem:[#allocation6] sm:$0xf] }
  0x2b   :  { %123 = vmatpush1.msra.mxu0 %v56_v11  ;;  %194 = vmatpush1.msra.mxu1 %v58_v12  ;;  %v73_v25 = vrot.slane %v68_v22, %v72_v20  ;;  %v81_v26 = vrot.slane %v68_v22, %v80_v21  ;;  %v77_v27 = vrot.slane %v68_v22, %v76_v23 }
  0x2c   :  { %124 = vmatprep.subr.mxu0 %v53_v13  ;;  %195 = vmatprep.subr.mxu1 %v55_v14  ;;  %v85_v28 = vrot.slane %v68_v22, %v84_v24 }
  0x2d   :  { %125 = vmatpush1.msra.mxu0 %v52_v15  ;;  %196 = vmatpush1.msra.mxu1 %v54_v16 }
  0x2e   :  { %246 = vmatmul.mubr.msk.f32.vlgmr.msra.gmra.mxu0 %vm90_vm0, %v51_v17  ;;  %247 = vmatmul.mubr.msk.f32.vlgmr.msra.gmra.mxu1 %vm90_vm0, %v51_v17 }
  0xee   :  { %v160_v29 = vpop.f32.mrf.mxu0  ;;  %v231_v30 = vpop.f32.mrf.mxu1 }
  0xef   :  { %v161_v31 = vadd.f32 %v160_v29, %v73_v25  ;;  %v232_v32 = vadd.f32 %v231_v30, %v81_v26 }
  0xf0   :  { %v162_v33 = vpop.f32.mrf.mxu0  ;;  %v233_v34 = vpop.f32.mrf.mxu1 }
  0xf1   :  { %236 = vst [vmem:[%s368_s3] sm:$0xff] %v161_v31  ;;  %238 = vst [vmem:[%s368_s3 + $0x10] sm:$0xff] %v232_v32  ;;  %v163_v35 = vadd.f32 %v162_v33, %v77_v27  ;;  %v234_v36 = vadd.f32 %v233_v34, %v85_v28 }
  0xf3   :  { %237 = vst [vmem:[%s368_s3 + $0x8] sm:$0xff] %v163_v35  ;;  %239 = vst [vmem:[%s368_s3 + $0x18] sm:$0xff] %v234_v36 }
  0xf4   :  { %244 = vsyncpa [#allocation3], 1 }
  0xf5   :  { %245 = vsyncpa [#allocation5], 1 }

</bundles_post_ra>
